<compile_context>
chip_gen: v6e
topology: v6e:2x2x1
jax: 0.10.0
libtpu: 0.0.40
codegen_flags: <defaults>
</compile_context>

<pallas_src>
import functools

import jax
import jax.numpy as jnp
from jax import lax
from jax.experimental import pallas as pl
from jax.experimental.pallas import tpu as pltpu

BN_EPS = 1e-5


def _cdiv(a, b):
    return -(-a // b)


def _round_up(x, m):
    return _cdiv(x, m) * m


def _vmem_capacity_bytes():
    try:
        info = pltpu.get_tpu_info()
        cap = getattr(info, "vmem_capacity_bytes", None)
        if cap:
            return int(cap)
    except Exception:
        pass
    return 64 << 20  # conservative per-core floor (v7x)


def _padded_k(k_dim, tk_max):
    """Pad K to a multiple of 128 that splits into <=tk_max multiple-of-128 tiles
    with minimal zero padding (avoids rounding K all the way up to a tile multiple)."""
    k128 = _round_up(k_dim, 128)
    n_k = _cdiv(k128, tk_max)
    tk = _round_up(_cdiv(k128, n_k), 128)
    return n_k * tk


def _pick_tile(total, t_max):
    """Largest multiple-of-128 divisor of `total` that is <= t_max (fallback: total)."""
    t = max(128, min(t_max, total))
    t = (t // 128) * 128
    while t > 128 and total % t != 0:
        t -= 128
    return t if total % t == 0 else total


def prepare_teacher_params(w, gamma, beta, *, tk_max=2048, compute_dtype=jnp.bfloat16):
    """One-time (offline) pad + cast of the frozen encoder weight and BN affine params.

    Hoisted out of the per-call path: building the padded bf16 W every call costs a
    full extra HBM pass over W, comparable to the kernel's own W read traffic.
    """
    k_dim, out_dim = w.shape
    k_pad = _padded_k(k_dim, tk_max)
    out_pad = _round_up(out_dim, 128)
    wp = jnp.zeros((k_pad, out_pad), compute_dtype).at[:k_dim, :out_dim].set(
        w.astype(compute_dtype)
    )
    gp = jnp.zeros((1, out_pad), jnp.float32).at[0, :out_dim].set(
        gamma.astype(jnp.float32)
    )
    bp = jnp.zeros((1, out_pad), jnp.float32).at[0, :out_dim].set(
        beta.astype(jnp.float32)
    )
    return wp, gp, bp


def _teacher_kernel(x_ref, w_ref, g_ref, beta_ref, o_ref, *, n_real, tk, x_resident):
    """Fused encoder-matmul + BatchNorm1d (batch statistics) kernel.

    grid = (OUT tiles [parallel], K tiles [arbitrary, trailing]).  The (n_pad, tn)
    f32 output block stays resident across the K axis and doubles as the matmul
    accumulator; the BN epilogue runs in place on the final K step.
    """
    k = pl.program_id(1)

    @pl.when(k == 0)
    def _():
        o_ref[...] = jnp.zeros_like(o_ref)

    if x_resident:
        # x held resident in VMEM (DMA'd once); take this step's K slice.
        x_blk = x_ref[:, pl.ds(pl.multiple_of(k * tk, 128), tk)]
    else:
        x_blk = x_ref[...]

    # Encoder: partial matmul over this K tile (bf16 operands, f32 accumulation).
    o_ref[...] += jnp.dot(x_blk, w_ref[...], preferred_element_type=jnp.float32)

    @pl.when(k == pl.num_programs(1) - 1)
    def _():
        feat = o_ref[...]                                   # (n_pad, tn) f32
        # Mask zero-padded batch rows so statistics use the true batch size.
        valid = (
            lax.broadcasted_iota(jnp.int32, feat.shape, 0) < n_real
        ).astype(jnp.float32)
        inv_n = jnp.float32(1.0 / n_real)
        mean = jnp.sum(feat * valid, axis=0, keepdims=True) * inv_n
        centered = feat - mean
        var = jnp.sum(centered * centered * valid, axis=0, keepdims=True) * inv_n
        inv_std = lax.rsqrt(var + BN_EPS)
        o_ref[...] = (g_ref[...] * inv_std) * centered + beta_ref[...]


@functools.partial(jax.jit, static_argnames=("out_dim", "tk_max", "tn_max"))
def projector_distillation_teacher(x, wp, gp, bp, *, out_dim, tk_max=2048, tn_max=1024):
    """x: (N, C, H, W) float32; wp/gp/bp: pre-padded params from prepare_teacher_params.

    Returns the (N, out_dim) f32 teacher features (Linear encoder + BatchNorm1d).
    """
    n = x.shape[0]
    x_flat = x.reshape(n, -1)                       # flatten NCHW -> (N, K)
    k_dim = x_flat.shape[1]
    k_pad, out_pad = wp.shape
    compute_dtype = wp.dtype
    elt = jnp.dtype(compute_dtype).itemsize
    assert k_dim <= k_pad and out_dim <= out_pad

    # ---- static tiling plan ----------------------------------------------
    sub = {1: 32, 2: 16, 4: 8}.get(elt, 8)          # sublane packing of compute dtype
    n_pad = max(sub, _round_up(n, sub))
    tk = _pick_tile(k_pad, tk_max)
    tn = _pick_tile(out_pad, tn_max)
    if out_pad // tn < 2 and out_pad >= 256:        # give megacore >=2 OUT tiles
        tn = _pick_tile(out_pad, out_pad // 2)

    usable_vmem = int(0.70 * _vmem_capacity_bytes())   # ~45 MiB v7x, ~90 MiB v6e/v5e
    x_resident = n_pad * k_pad * elt <= min(8 << 20, usable_vmem // 4)

    def _est(resident, tk_, tn_):
        x_bytes = n_pad * (k_pad if resident else tk_) * elt
        return 2 * x_bytes + 2 * tk_ * tn_ * elt + 2 * n_pad * tn_ * 4 + 4 * tn_ * 4

    est = _est(x_resident, tk, tn)
    # VMEM-pressure fallback (matters mostly on v7x's 64 MiB VMEM / large batches).
    while est > usable_vmem:
        if x_resident:
            x_resident = False
        elif tk > 128 and tk % 256 == 0 and k_pad % (tk // 2) == 0:
            tk //= 2
        elif tn > 128 and tn % 256 == 0 and out_pad % (tn // 2) == 0:
            tn //= 2
        else:
            break
        est = _est(x_resident, tk, tn)
    # TODO(synk): N-tiled two-pass BN (per-tile sum / sum-of-squares scratch) for
    #             batches whose resident rows still exceed the VMEM budget.

    vmem_limit = int(min(max(int(est * 1.5), 32 << 20), usable_vmem))

    # ---- pad activations (frozen params were padded once, offline) --------
    xp = jnp.zeros((n_pad, k_pad), compute_dtype).at[:n, :k_dim].set(
        x_flat.astype(compute_dtype)
    )

    grid = (out_pad // tn, k_pad // tk)             # (parallel OUT tiles, serial K)
    if x_resident:
        x_spec = pl.BlockSpec((n_pad, k_pad), lambda j, k: (0, 0))   # DMA'd once
    else:
        x_spec = pl.BlockSpec((n_pad, tk), lambda j, k: (0, k))      # streamed K tiles

    kernel = functools.partial(
        _teacher_kernel, n_real=n, tk=tk, x_resident=x_resident
    )

    out = pl.pallas_call(
        kernel,
        out_shape=jax.ShapeDtypeStruct((n_pad, out_pad), jnp.float32),
        grid_spec=pl.GridSpec(
            grid=grid,
            in_specs=[
                x_spec,
                pl.BlockSpec((tk, tn), lambda j, k: (k, j)),   # encoder weight tile
                pl.BlockSpec((1, tn), lambda j, k: (0, j)),    # BN gamma
                pl.BlockSpec((1, tn), lambda j, k: (0, j)),    # BN beta
            ],
            out_specs=pl.BlockSpec((n_pad, tn), lambda j, k: (0, j)),
        ),
        compiler_params=pltpu.CompilerParams(
            dimension_semantics=("parallel", "arbitrary"),
            vmem_limit_bytes=vmem_limit,
        ),
    )(xp, wp, gp, bp)

    return out[:n, :out_dim]


def _reference(x, w, b, gamma, beta, *, compute_dtype=jnp.float32):
    """Pure-JAX reference matching the PyTorch module (encoder Linear + bias, BN1d)."""
    n = x.shape[0]
    xf = x.reshape(n, -1)
    feat = (
        jnp.dot(
            xf.astype(compute_dtype),
            w.astype(compute_dtype),
            preferred_element_type=jnp.float32,
        )
        + b
    )
    mean = jnp.mean(feat, axis=0, keepdims=True)
    var = jnp.mean((feat - mean) ** 2, axis=0, keepdims=True)
    return gamma * (feat - mean) / jnp.sqrt(var + BN_EPS) + beta


if __name__ == "__main__":
    # Small shapes: batch=2, channels=4, spatial=16x16, OUT=32.
    N, C, H, W = 2, 4, 16, 16
    OUT = 32
    K = C * H * W  # 1024

    key = jax.random.PRNGKey(0)
    kx, kw, kb = jax.random.split(key, 3)

    x = jax.random.normal(kx, (N, C, H, W), dtype=jnp.float32)

    # Deterministic synthetic encoder (Linear) parameters.
    w_enc = jax.random.normal(kw, (K, OUT), dtype=jnp.float32) / jnp.sqrt(
        jnp.float32(K)
    )
    b_enc = jax.random.normal(kb, (OUT,), dtype=jnp.float32) * 0.01

    # BatchNorm1d default affine init: weight=1, bias=0.
    bn_gamma = jnp.ones((OUT,), dtype=jnp.float32)
    bn_beta = jnp.zeros((OUT,), dtype=jnp.float32)

    # One-time offline prep of the frozen encoder / BN params (pad + bf16 cast).
    wp, gp, bp = prepare_teacher_params(w_enc, bn_gamma, bn_beta)

    out = projector_distillation_teacher(x, wp, gp, bp, out_dim=OUT)
    out = jax.block_until_ready(out)

    # Reference includes the encoder bias; BN's mean subtraction cancels it, so the
    # kernel (which drops the dead bias input) must still match.  Compared at matching
    # matmul precision (bf16 operands, f32 accumulation).
    ref = _reference(x, w_enc, b_enc, bn_gamma, bn_beta, compute_dtype=jnp.bfloat16)
    assert out.shape == (N, OUT)
    assert jnp.allclose(out, ref, atol=1e-2, rtol=1e-2), "mismatch vs reference"

    print("KERNEL_OK")
</pallas_src>

<mosaic_0001>
module attributes {stable_mosaic.version = 11 : i64} {
  func.func @_teacher_kernel(%arg0: i32, %arg1: i32, %arg2: memref<16x1024xbf16, #tpu.memory_space<vmem>>, %arg3: memref<1024x128xbf16, #tpu.memory_space<vmem>>, %arg4: memref<1x128xf32, #tpu.memory_space<vmem>>, %arg5: memref<1x128xf32, #tpu.memory_space<vmem>>, %arg6: memref<16x128xf32, #tpu.memory_space<vmem>>) attributes {dimension_semantics = [#tpu.dimension_semantics<parallel>, #tpu.dimension_semantics<arbitrary>], iteration_bounds = array<i64: 1, 1>, scalar_prefetch = 0 : i64, scratch_operands = 0 : i64, tpu.core_type = #tpu.core_type<tc>, window_params = [{pipeline_mode = #tpu.pipeline_mode<synchronous>, transform_indices = @transform_0, window_bounds = array<i64: 16, 1024>}, {transform_indices = @transform_1, window_bounds = array<i64: 1024, 128>}, {transform_indices = @transform_2, window_bounds = array<i64: 1, 128>}, {transform_indices = @transform_3, window_bounds = array<i64: 1, 128>}, {transform_indices = @transform_4, window_bounds = array<i64: 16, 128>}]} {
    %c0_i32 = arith.constant 0 : i32
    %0 = arith.cmpi eq, %arg1, %c0_i32 : i32
    %1 = arith.extui %0 : i1 to i32
    %c0_i32_0 = arith.constant 0 : i32
    %2 = arith.cmpi ne, %1, %c0_i32_0 : i32
    scf.if %2 {
      %cst_9 = arith.constant 0.000000e+00 : f32
      %15 = vector.broadcast %cst_9 : f32 to vector<16x128xf32>
      %c0_10 = arith.constant 0 : index
      %c0_11 = arith.constant 0 : index
      %16 = vector.load %arg6[%c0_10, %c0_11] : memref<16x128xf32, #tpu.memory_space<vmem>>, vector<16x128xf32>
      tpu.vector_store %arg6[%c0_10, %c0_11], %15 {strides = array<i32>} : memref<16x128xf32, #tpu.memory_space<vmem>>, vector<16x128xf32>,
    } else {
    }
    %c1024_i32 = arith.constant 1024 : i32
    %3 = arith.muli %arg1, %c1024_i32 : i32
    %4 = tpu.assume_multiple %3, 128 : i32
    %c0 = arith.constant 0 : index
    %5 = arith.index_cast %4 : i32 to index
    %6 = vector.load %arg2[%c0, %5] : memref<16x1024xbf16, #tpu.memory_space<vmem>>, vector<16x1024xbf16>
    %c0_1 = arith.constant 0 : index
    %c0_2 = arith.constant 0 : index
    %7 = vector.load %arg6[%c0_1, %c0_2] : memref<16x128xf32, #tpu.memory_space<vmem>>, vector<16x128xf32>
    %c0_3 = arith.constant 0 : index
    %c0_4 = arith.constant 0 : index
    %8 = vector.load %arg3[%c0_3, %c0_4] : memref<1024x128xbf16, #tpu.memory_space<vmem>>, vector<1024x128xbf16>
    %cst = arith.constant dense<0.000000e+00> : vector<16x128xf32>
    %9 = tpu.matmul %6, %8, %cst {dimension_numbers = #tpu.dot_dimension_numbers<[1], [0], [0], [1], [0, 0, 1, 1], [], []>} : vector<16x1024xbf16>, vector<1024x128xbf16>, vector<16x128xf32> -> vector<16x128xf32>
    %10 = arith.addf %7, %9 : vector<16x128xf32>
    %c0_5 = arith.constant 0 : index
    %c0_6 = arith.constant 0 : index
    %11 = vector.load %arg6[%c0_5, %c0_6] : memref<16x128xf32, #tpu.memory_space<vmem>>, vector<16x128xf32>
    tpu.vector_store %arg6[%c0_5, %c0_6], %10 {strides = array<i32>} : memref<16x128xf32, #tpu.memory_space<vmem>>, vector<16x128xf32>,
    %c0_i32_7 = arith.constant 0 : i32
    %12 = arith.cmpi eq, %arg1, %c0_i32_7 : i32
    %13 = arith.extui %12 : i1 to i32
    %c0_i32_8 = arith.constant 0 : i32
    %14 = arith.cmpi ne, %13, %c0_i32_8 : i32
    scf.if %14 {
      %c0_9 = arith.constant 0 : index
      %c0_10 = arith.constant 0 : index
      %15 = vector.load %arg6[%c0_9, %c0_10] : memref<16x128xf32, #tpu.memory_space<vmem>>, vector<16x128xf32>
      %16 = tpu.iota {dimensions = array<i32: 0>} : vector<16x128xi32>
      %c2_i32 = arith.constant 2 : i32
      %17 = vector.broadcast %c2_i32 : i32 to vector<16x128xi32>
      %18 = arith.cmpi slt, %16, %17 : vector<16x128xi32>
      %19 = arith.extui %18 : vector<16x128xi1> to vector<16x128xi32>
      %20 = arith.sitofp %19 : vector<16x128xi32> to vector<16x128xf32>
      %21 = arith.mulf %15, %20 : vector<16x128xf32>
      %cst_11 = arith.constant dense<0.000000e+00> : vector<128xf32>
      %22 = vector.multi_reduction <add>, %21, %cst_11 [0] : vector<16x128xf32> to vector<128xf32>
      %23 = vector.shape_cast %22 : vector<128xf32> to vector<1x128xf32>
      %cst_12 = arith.constant 5.000000e-01 : f32
      %24 = vector.broadcast %cst_12 : f32 to vector<1x128xf32>
      %25 = arith.mulf %23, %24 : vector<1x128xf32>
      %26 = vector.broadcast %25 : vector<1x128xf32> to vector<16x128xf32>
      %27 = arith.subf %15, %26 : vector<16x128xf32>
      %28 = arith.mulf %27, %27 : vector<16x128xf32>
      %29 = arith.mulf %28, %20 : vector<16x128xf32>
      %cst_13 = arith.constant dense<0.000000e+00> : vector<128xf32>
      %30 = vector.multi_reduction <add>, %29, %cst_13 [0] : vector<16x128xf32> to vector<128xf32>
      %31 = vector.shape_cast %30 : vector<128xf32> to vector<1x128xf32>
      %cst_14 = arith.constant 5.000000e-01 : f32
      %32 = vector.broadcast %cst_14 : f32 to vector<1x128xf32>
      %33 = arith.mulf %31, %32 : vector<1x128xf32>
      %cst_15 = arith.constant 9.99999974E-6 : f32
      %34 = vector.broadcast %cst_15 : f32 to vector<1x128xf32>
      %35 = arith.addf %33, %34 : vector<1x128xf32>
      %36 = math.rsqrt %35 : vector<1x128xf32>
      %c0_16 = arith.constant 0 : index
      %c0_17 = arith.constant 0 : index
      %37 = vector.load %arg4[%c0_16, %c0_17] : memref<1x128xf32, #tpu.memory_space<vmem>>, vector<1x128xf32>
      %38 = arith.mulf %37, %36 : vector<1x128xf32>
      %39 = vector.broadcast %38 : vector<1x128xf32> to vector<16x128xf32>
      %40 = arith.mulf %39, %27 : vector<16x128xf32>
      %c0_18 = arith.constant 0 : index
      %c0_19 = arith.constant 0 : index
      %41 = vector.load %arg5[%c0_18, %c0_19] : memref<1x128xf32, #tpu.memory_space<vmem>>, vector<1x128xf32>
      %42 = vector.broadcast %41 : vector<1x128xf32> to vector<16x128xf32>
      %43 = arith.addf %40, %42 : vector<16x128xf32>
      %c0_20 = arith.constant 0 : index
      %c0_21 = arith.constant 0 : index
      %44 = vector.load %arg6[%c0_20, %c0_21] : memref<16x128xf32, #tpu.memory_space<vmem>>, vector<16x128xf32>
      tpu.vector_store %arg6[%c0_20, %c0_21], %43 {strides = array<i32>} : memref<16x128xf32, #tpu.memory_space<vmem>>, vector<16x128xf32>,
    } else {
    }
    return
  }
  func.func @transform_0(%arg0: i32, %arg1: i32) -> (i32, i32) {
    %c0_i32 = arith.constant 0 : i32
    %c0_i32_0 = arith.constant 0 : i32
    %c0_i32_1 = arith.constant 0 : i32
    return %c0_i32, %c0_i32_0 : i32, i32
  }
  func.func @transform_1(%arg0: i32, %arg1: i32) -> (i32, i32) {
    %c0_i32 = arith.constant 0 : i32
    return %arg1, %arg0 : i32, i32
  }
  func.func @transform_2(%arg0: i32, %arg1: i32) -> (i32, i32) {
    %c0_i32 = arith.constant 0 : i32
    %c0_i32_0 = arith.constant 0 : i32
    return %c0_i32, %arg0 : i32, i32
  }
  func.func @transform_3(%arg0: i32, %arg1: i32) -> (i32, i32) {
    %c0_i32 = arith.constant 0 : i32
    %c0_i32_0 = arith.constant 0 : i32
    return %c0_i32, %arg0 : i32, i32
  }
  func.func @transform_4(%arg0: i32, %arg1: i32) -> (i32, i32) {
    %c0_i32 = arith.constant 0 : i32
    %c0_i32_0 = arith.constant 0 : i32
    return %c0_i32, %arg0 : i32, i32
  }
}

</mosaic_0001>

<bundles_post_ra>
// kernel: projector_distillation_teacher.1
= control target key start
LH: loop header
LB: loop body
LE: loop exit
PB: predicated region body
PF: predicated region fallthrough
CT: control target
= control target key end

     0   :  { %9 = vsyncpa [#allocation3], 0  ;;  %s1095_s15 = smov [#allocation2]   ;;  %s1163_s0 = inlined_call_operand.vmem [shape: bf16[16,1024], index: 0, kind: input, shape index: {}]   ;;  %s1164_s1 = inlined_call_operand.hbm [shape: bf16[1024,128], index: 1, kind: input, shape index: {}]   ;;  %s1165_s2 = inlined_call_operand.vmem [shape: f32[1,128], index: 2, kind: input, shape index: {}]   ;;  %s1166_s3 = inlined_call_operand.vmem [shape: f32[1,128], index: 3, kind: input, shape index: {}]   ;;  %s1167_s4 = inlined_call_operand.vmem [shape: f32[16,128], index: 4, kind: output, shape index: {}]  }
   0x1   :  { %s17_s16 = sshll.u32 %s1095_s15, 4  ;;  %s18_s16 = int_to_ptr.vmem [resolvable:$true] %s17_s16 }
   0x2   :  { %s1081_s17 = scalar_lea.vmem %s18_s16, 8192  ;;  %p1086_p1 = scmp.lt.s32.totalorder %s18_s16, %s18_s16 }
   0x3   :  { %p1082_p0 = scmp.ne.s32.totalorder %s18_s16, %s1081_s17  ;;  %p1087_p2 = scmp.lt.s32.totalorder %s1081_s17, %s1081_s17 }
   0x5   :  { %p1088_p3 = por %p1087_p2, %p1086_p1 }
   0x7   :  { %p1089_p4 = pnand %p1088_p3, %p1082_p0 }
   0x9   :  { %1092 = shalt.err (!%p1089_p4)
}
   0xa   :  { %s1096_s18 = smov 64   ;;  %s1097_s19 = smov 4  }
   0xb   :  { %23 = dma.hbm_to_vmem [thread:$0]  %s1164_s1, 8192, %s18_s16, [#allocation3], %s1096_s18, %s1096_s18, %s1097_s19  }
   0xc   :  { %1093 = dma.done.wait [#allocation3], 8192  }
   0xd   :  { %1094 = vsyncadd [#allocation3], 4294959104  ;;  %v1007_v0 = vld [vmem:[#allocation2 + $0x78] sm:$0xff]   ;;  %v1011_v4 = vld [vmem:[#allocation2 + $0x70] sm:$0xff]  }
   0xe   :  { %v1008_v1 = vld [vmem:[#allocation2 + $0xf8] sm:$0xff]   ;;  %915 = vmatprep.subr.bf16.mxu0 %v1007_v0  ;;  %v1012_v5 = vld [vmem:[#allocation2 + $0xf0] sm:$0xff]   ;;  %v1015_v8 = vld [vmem:[#allocation2 + $0x68] sm:$0xff]  }
   0xf   :  { %v1009_v2 = vld [vmem:[#allocation2 + $0x38] sm:$0xff]   ;;  %937 = vmatprep.subr.bf16.mxu1 %v1008_v1  ;;  %v1013_v6 = vld [vmem:[#allocation2 + $0x30] sm:$0xff]   ;;  %v1016_v9 = vld [vmem:[#allocation2 + $0xe8] sm:$0xff]  }
  0x10   :  { %v1010_v3 = vld [vmem:[#allocation2 + $0xb8] sm:$0xff]   ;;  %916 = vmatpush3.bf16.msra.mxu0 %v1009_v2  ;;  %v1014_v7 = vld [vmem:[#allocation2 + $0xb0] sm:$0xff]   ;;  %v1017_v10 = vld [vmem:[#allocation2 + $0x28] sm:$0xff]  }
  0x11   :  { %938 = vmatpush3.bf16.msra.mxu1 %v1010_v3  ;;  %917 = vmatprep.subr.bf16.mxu0 %v1011_v4  ;;  %v1018_v11 = vld [vmem:[#allocation2 + $0xa8] sm:$0xff]   ;;  %v1019_v12 = vld [vmem:[#allocation2 + $0x60] sm:$0xff]   ;;  %v1023_v16 = vld [vmem:[#allocation2 + $0x58] sm:$0xff]  }
  0x12   :  { %939 = vmatprep.subr.bf16.mxu1 %v1012_v5  ;;  %v1020_v13 = vld [vmem:[#allocation2 + $0xe0] sm:$0xff]   ;;  %v1024_v17 = vld [vmem:[#allocation2 + $0xd8] sm:$0xff]   ;;  %v1027_v20 = vld [vmem:[#allocation2 + $0x50] sm:$0xff]  }
  0x13   :  { %v1021_v14 = vld [vmem:[#allocation2 + $0x20] sm:$0xff]   ;;  %v1025_v18 = vld [vmem:[#allocation2 + $0x18] sm:$0xff]   ;;  %v1028_v21 = vld [vmem:[#allocation2 + $0xd0] sm:$0xff]  }
  0x14   :  { %918 = vmatpush3.bf16.msra.mxu0 %v1013_v6  ;;  %v1022_v15 = vld [vmem:[#allocation2 + $0xa0] sm:$0xff]   ;;  %v1026_v19 = vld [vmem:[#allocation2 + $0x98] sm:$0xff]   ;;  %v1029_v22 = vld [vmem:[#allocation2 + $0x10] sm:$0xff]  }
  0x15   :  { %940 = vmatpush3.bf16.msra.mxu1 %v1014_v7  ;;  %919 = vmatprep.subr.bf16.mxu0 %v1015_v8  ;;  %v1030_v23 = vld [vmem:[#allocation2 + $0x90] sm:$0xff]   ;;  %v1031_v24 = vld [vmem:[#allocation2 + $0x48] sm:$0xff]   ;;  %v1035_v28 = vld [vmem:[#allocation2 + $0x40] sm:$0xff]  }
  0x16   :  { %941 = vmatprep.subr.bf16.mxu1 %v1016_v9  ;;  %v1032_v25 = vld [vmem:[#allocation2 + $0xc8] sm:$0xff]   ;;  %v1036_v29 = vld [vmem:[#allocation2 + $0xc0] sm:$0xff]   ;;  %v1039_v40 = vld [vmem:[#allocation2 + $0x178] sm:$0xff]  }
  0x17   :  { %v1033_v26 = vld [vmem:[#allocation2 + $0x8] sm:$0xff]   ;;  %v1037_v30 = vld [vmem:[#allocation2] sm:$0xff]   ;;  %v1040_v41 = vld [vmem:[#allocation2 + $0x1f8] sm:$0xff]  }
  0x18   :  { %920 = vmatpush3.bf16.msra.mxu0 %v1017_v10  ;;  %v1034_v27 = vld [vmem:[#allocation2 + $0x88] sm:$0xff]   ;;  %v1038_v31 = vld [vmem:[#allocation2 + $0x80] sm:$0xff]   ;;  %v1041_v42 = vld [vmem:[#allocation2 + $0x138] sm:$0xff]  }
  0x19   :  { %942 = vmatpush3.bf16.msra.mxu1 %v1018_v11  ;;  %921 = vmatprep.subr.bf16.mxu0 %v1019_v12  ;;  %v43_v32 = vld [vmem:[%s1163_s0] sm:$0xff]  ;;  %v44_v34 = vld [vmem:[%s1163_s0 + $0x8] sm:$0xff]  ;;  %v1042_v43 = vld [vmem:[#allocation2 + $0x1b8] sm:$0xff]  }
  0x1a   :  { %943 = vmatprep.subr.bf16.mxu1 %v1020_v13  ;;  %v47_v33 = vld [vmem:[%s1163_s0 + $0x20] sm:$0xff]  ;;  %v48_v37 = vld [vmem:[%s1163_s0 + $0x28] sm:$0xff]  ;;  %v1043_v44 = vld [vmem:[#allocation2 + $0x170] sm:$0xff]  }
  0x1b   :  { %v841_v35 = vcombine.low %v43_v32, %v47_v33  ;;  %v842_v36 = vcombine.high %v43_v32, %v47_v33  ;;  %v843_v38 = vcombine.low %v44_v34, %v48_v37  ;;  %v844_v39 = vcombine.high %v44_v34, %v48_v37  ;;  %v1044_v45 = vld [vmem:[#allocation2 + $0x1f0] sm:$0xff]   ;;  %v1047_v48 = vld [vmem:[#allocation2 + $0x168] sm:$0xff]   ;;  %v1051_v52 = vld [vmem:[#allocation2 + $0x160] sm:$0xff]  }
  0x1c   :  { %922 = vmatpush3.bf16.msra.mxu0 %v1021_v14  ;;  %v1045_v46 = vld [vmem:[#allocation2 + $0x130] sm:$0xff]   ;;  %v1048_v49 = vld [vmem:[#allocation2 + $0x1e8] sm:$0xff]   ;;  %v1052_v53 = vld [vmem:[#allocation2 + $0x1e0] sm:$0xff]  }
  0x1d   :  { %944 = vmatpush3.bf16.msra.mxu1 %v1022_v15  ;;  %923 = vmatprep.subr.bf16.mxu0 %v1023_v16  ;;  %v1046_v47 = vld [vmem:[#allocation2 + $0x1b0] sm:$0xff]   ;;  %v1049_v50 = vld [vmem:[#allocation2 + $0x128] sm:$0xff]   ;;  %v1053_v54 = vld [vmem:[#allocation2 + $0x120] sm:$0xff]  }
  0x1e   :  { %945 = vmatprep.subr.bf16.mxu1 %v1024_v17  ;;  %637 = vmatprep.mubr.bf16.mxu0 %v842_v36  ;;  %v1050_v51 = vld [vmem:[#allocation2 + $0x1a8] sm:$0xff]   ;;  %v1054_v55 = vld [vmem:[#allocation2 + $0x1a0] sm:$0xff]   ;;  %v1055_v56 = vld [vmem:[#allocation2 + $0x158] sm:$0xff]  }
  0x1f   :  { %678 = vmatprep.mubr.bf16.mxu1 %v844_v39  ;;  %v1056_v57 = vld [vmem:[#allocation2 + $0x1d8] sm:$0xff]   ;;  %v1059_v60 = vld [vmem:[#allocation2 + $0x150] sm:$0xff]   ;;  %v1063_v0 = vld [vmem:[#allocation2 + $0x148] sm:$0xff]  }
  0x20   :  { %924 = vmatpush3.bf16.msra.mxu0 %v1025_v18  ;;  %v1057_v58 = vld [vmem:[#allocation2 + $0x118] sm:$0xff]   ;;  %v1060_v61 = vld [vmem:[#allocation2 + $0x1d0] sm:$0xff]   ;;  %v1064_v1 = vld [vmem:[#allocation2 + $0x1c8] sm:$0xff]  }
  0x21   :  { %946 = vmatpush3.bf16.msra.mxu1 %v1026_v19  ;;  %925 = vmatprep.subr.bf16.mxu0 %v1027_v20  ;;  %v1058_v59 = vld [vmem:[#allocation2 + $0x198] sm:$0xff]   ;;  %v1061_v62 = vld [vmem:[#allocation2 + $0x110] sm:$0xff]   ;;  %v1065_v2 = vld [vmem:[#allocation2 + $0x108] sm:$0xff]  }
  0x22   :  { %947 = vmatprep.subr.bf16.mxu1 %v1028_v21  ;;  %v1062_v63 = vld [vmem:[#allocation2 + $0x190] sm:$0xff]   ;;  %v1066_v3 = vld [vmem:[#allocation2 + $0x188] sm:$0xff]   ;;  %v1067_v4 = vld [vmem:[#allocation2 + $0x140] sm:$0xff]  }
  0x23   :  { %v1068_v5 = vld [vmem:[#allocation2 + $0x1c0] sm:$0xff]   ;;  %v45_v8 = vld [vmem:[%s1163_s0 + $0x10] sm:$0xff]  ;;  %v46_v12 = vld [vmem:[%s1163_s0 + $0x18] sm:$0xff] }
  0x24   :  { %926 = vmatpush3.bf16.msra.mxu0 %v1029_v22  ;;  %v1069_v6 = vld [vmem:[#allocation2 + $0x100] sm:$0xff]   ;;  %v49_v9 = vld [vmem:[%s1163_s0 + $0x30] sm:$0xff]  ;;  %v50_v13 = vld [vmem:[%s1163_s0 + $0x38] sm:$0xff] }
  0x25   :  { %948 = vmatpush3.bf16.msra.mxu1 %v1030_v23  ;;  %927 = vmatprep.subr.bf16.mxu0 %v1031_v24  ;;  %v1070_v7 = vld [vmem:[#allocation2 + $0x180] sm:$0xff]   ;;  %v845_v10 = vcombine.low %v45_v8, %v49_v9  ;;  %v846_v11 = vcombine.high %v45_v8, %v49_v9  ;;  %v847_v14 = vcombine.low %v46_v12, %v50_v13 }
  0x26   :  { %949 = vmatprep.subr.bf16.mxu1 %v1032_v25  ;;  %v848_v15 = vcombine.high %v46_v12, %v50_v13 }
  0x28   :  { %928 = vmatpush3.bf16.msra.mxu0 %v1033_v26 }
  0x29   :  { %950 = vmatpush3.bf16.msra.mxu1 %v1034_v27  ;;  %929 = vmatprep.subr.bf16.mxu0 %v1035_v28  ;;  %v778_v28 = vlaneseq }
  0x2a   :  { %951 = vmatprep.subr.bf16.mxu1 %v1036_v29 }
  0x2c   :  { %930 = vmatpush3.bf16.msra.mxu0 %v1037_v30 }
  0x2d   :  { %952 = vmatpush3.bf16.msra.mxu1 %v1038_v31  ;;  %959 = vmatprep.subr.bf16.mxu0 %v1039_v40 }
  0x2e   :  { %981 = vmatprep.subr.bf16.mxu1 %v1040_v41 }
  0x2f   :  { %638 = vmatmul.mubr.bf16.vlgmr.msra.gmra.mxu0 %v841_v35 }
  0x30   :  { %679 = vmatmul.mubr.bf16.vlgmr.msra.gmra.mxu1 %v843_v38  ;;  %960 = vmatpush3.bf16.msra.mxu0 %v1041_v42  ;;  %v779_v38 = vshrl.u32 %v778_v28, 7 }
  0x31   :  { %982 = vmatpush3.bf16.msra.mxu1 %v1042_v43  ;;  %961 = vmatprep.subr.bf16.mxu0 %v1043_v44 }
  0x32   :  { %983 = vmatprep.subr.bf16.mxu1 %v1044_v45  ;;  %719 = vmatprep.mubr.bf16.mxu0 %v846_v11  ;;  %vm781_vm0 = vcmp.lt.s32.totalorder %v779_v38, 2  ;;  %v813_v11 = vld [vmem:[%s1165_s2] sm:$0x1]  ;;  %v818_v12 = vsub.s32 0, %v779_v38 }
  0x33   :  { %760 = vmatprep.mubr.bf16.mxu1 %v848_v15 }
  0x34   :  { %962 = vmatpush3.bf16.msra.mxu0 %v1045_v46 }
  0x35   :  { %984 = vmatpush3.bf16.msra.mxu1 %v1046_v47  ;;  %963 = vmatprep.subr.bf16.mxu0 %v1047_v48  ;;  %v1098_v48 = vmov 0.0  }
  0x36   :  { %985 = vmatprep.subr.bf16.mxu1 %v1048_v49  ;;  %v913_v49 = vsel %vm781_vm0, 1.0, %v1098_v48 }
  0x38   :  { %964 = vmatpush3.bf16.msra.mxu0 %v1049_v50 }
  0x39   :  { %986 = vmatpush3.bf16.msra.mxu1 %v1050_v51  ;;  %965 = vmatprep.subr.bf16.mxu0 %v1051_v52 }
  0x3a   :  { %987 = vmatprep.subr.bf16.mxu1 %v1052_v53 }
  0x3c   :  { %966 = vmatpush3.bf16.msra.mxu0 %v1053_v54 }
  0x3d   :  { %988 = vmatpush3.bf16.msra.mxu1 %v1054_v55  ;;  %967 = vmatprep.subr.bf16.mxu0 %v1055_v56 }
  0x3e   :  { %989 = vmatprep.subr.bf16.mxu1 %v1056_v57 }
  0x40   :  { %968 = vmatpush3.bf16.msra.mxu0 %v1057_v58 }
  0x41   :  { %990 = vmatpush3.bf16.msra.mxu1 %v1058_v59  ;;  %969 = vmatprep.subr.bf16.mxu0 %v1059_v60 }
  0x42   :  { %991 = vmatprep.subr.bf16.mxu1 %v1060_v61 }
  0x44   :  { %970 = vmatpush3.bf16.msra.mxu0 %v1061_v62 }
  0x45   :  { %992 = vmatpush3.bf16.msra.mxu1 %v1062_v63  ;;  %971 = vmatprep.subr.bf16.mxu0 %v1063_v0 }
  0x46   :  { %993 = vmatprep.subr.bf16.mxu1 %v1064_v1 }
  0x48   :  { %972 = vmatpush3.bf16.msra.mxu0 %v1065_v2 }
  0x49   :  { %994 = vmatpush3.bf16.msra.mxu1 %v1066_v3  ;;  %973 = vmatprep.subr.bf16.mxu0 %v1067_v4 }
  0x4a   :  { %995 = vmatprep.subr.bf16.mxu1 %v1068_v5 }
  0x4c   :  { %974 = vmatpush3.bf16.msra.mxu0 %v1069_v6 }
  0x4d   :  { %996 = vmatpush3.bf16.msra.mxu1 %v1070_v7 }
  0x4f   :  { %720 = vmatmul.mubr.bf16.vlgmr.msra.gmra.mxu0 %v845_v10 }
  0x50   :  { %761 = vmatmul.mubr.bf16.vlgmr.msra.gmra.mxu1 %v847_v14 }
  0xef   :  { %v931_v16 = vpop.f32.mrf.mxu0 }
  0xf0   :  { %v953_v17 = vpop.f32.mrf.mxu1 }
  0xf1   :  { %v932_v18 = vpop.f32.mrf.mxu0 }
  0xf2   :  { %v954_v19 = vpop.f32.mrf.mxu1  ;;  %v933_v23 = vadd.f32 %v932_v18, %v931_v16  ;;  %v914_v16 = vld [vmem:[%s1166_s3] ss:$0 sm:$0xff] }
  0xf3   :  { %v934_v20 = vpop.f32.mrf.mxu0  ;;  %v955_v24 = vadd.f32 %v954_v19, %v953_v17 }
  0xf4   :  { %v956_v21 = vpop.f32.mrf.mxu1 }
  0xf5   :  { %v935_v22 = vpop.f32.mrf.mxu0  ;;  %v681_v30 = vadd.f32 %v955_v24, %v933_v23 }
  0xf6   :  { %v957_v25 = vpop.f32.mrf.mxu1  ;;  %v936_v31 = vadd.f32 %v935_v22, %v934_v20 }
  0xf7   :  { %v958_v32 = vadd.f32 %v957_v25, %v956_v21 }
  0xf9   :  { %v684_v41 = vadd.f32 %v958_v32, %v936_v31 }
 0x10f   :  { %v975_v26 = vpop.f32.mrf.mxu0 }
 0x110   :  { %v997_v27 = vpop.f32.mrf.mxu1 }
 0x111   :  { %v976_v29 = vpop.f32.mrf.mxu0 }
 0x112   :  { %v977_v33 = vadd.f32 %v976_v29, %v975_v26  ;;  %v998_v34 = vpop.f32.mrf.mxu1 }
 0x113   :  { %v978_v35 = vpop.f32.mrf.mxu0  ;;  %v999_v37 = vadd.f32 %v998_v34, %v997_v27 }
 0x114   :  { %v722_v36 = vadd.f32 %v977_v33, %v681_v30  ;;  %v1000_v39 = vpop.f32.mrf.mxu1 }
 0x115   :  { %v979_v40 = vpop.f32.mrf.mxu0 }
 0x116   :  { %v763_v42 = vadd.f32 %v999_v37, %v722_v36  ;;  %v980_v43 = vadd.f32 %v979_v40, %v978_v35  ;;  %v1001_v44 = vpop.f32.mrf.mxu1 }
 0x117   :  { %v1002_v46 = vadd.f32 %v1001_v44, %v1000_v39 }
 0x118   :  { %v725_v45 = vadd.f32 %v980_v43, %v684_v41  ;;  %v787_v50 = vmul.f32 %v913_v49, %v763_v42 }
 0x11a   :  { %v766_v47 = vadd.f32 %v1002_v46, %v725_v45 }
 0x11c   :  { %v788_v51 = vmul.f32 0.0, %v766_v47 }
 0x11e   :  { %v789_v52 = vadd.f32 %v788_v51, %v787_v50 }
 0x120   :  { %v790_v53 = vrot.slane %v789_v52, 4 }
 0x122   :  { %v791_v54 = vadd.f32 %v790_v53, %v789_v52 }
 0x124   :  { %v792_v55 = vrot.slane %v791_v54, 2 }
 0x126   :  { %v793_v56 = vadd.f32 %v792_v55, %v791_v54 }
 0x128   :  { %v794_v57 = vrot.slane %v793_v56, 1 }
 0x12a   :  { %v795_v58 = vadd.f32 %v794_v57, %v793_v56 }
 0x12c   :  { %v796_v59 = vmul.f32 0.5, %v795_v58 }
 0x12e   :  { %v797_v60 = vsub.f32 %v763_v42, %v796_v59  ;;  %v798_v61 = vsub.f32 %v766_v47, %v796_v59 }
 0x130   :  { %v799_v62 = vmul.f32 %v797_v60, %v797_v60  ;;  %v800_v63 = vmul.f32 %v798_v61, %v798_v61 }
 0x132   :  { %v801_v0 = vmul.f32 %v913_v49, %v799_v62  ;;  %v802_v1 = vmul.f32 0.0, %v800_v63 }
 0x134   :  { %v803_v2 = vadd.f32 %v802_v1, %v801_v0 }
 0x136   :  { %v804_v3 = vrot.slane %v803_v2, 4 }
 0x138   :  { %v805_v4 = vadd.f32 %v804_v3, %v803_v2 }
 0x13a   :  { %v806_v5 = vrot.slane %v805_v4, 2 }
 0x13c   :  { %v807_v6 = vadd.f32 %v806_v5, %v805_v4 }
 0x13e   :  { %v808_v7 = vrot.slane %v807_v6, 1 }
 0x140   :  { %v809_v8 = vadd.f32 %v808_v7, %v807_v6 }
 0x142   :  { %v810_v9 = vmul.f32 0.5, %v809_v8 }
 0x144   :  { %v811_v10 = vadd.f32 1e-05, %v810_v9 }
 0x146   :  { %1071 = vrsqrt.f32 %v811_v10 }
 0x153   :  { %v1072_v13 = vpop.eup %1071 }
 0x154   :  { %v814_v14 = vmul.f32 %v1072_v13, %v813_v11 }
 0x156   :  { %v819_v15 = vrot.slane %v814_v14, %v818_v12 }
 0x158   :  { %v821_v17 = vmul.f32 %v819_v15, %v797_v60  ;;  %v822_v18 = vmul.f32 %v819_v15, %v798_v61 }
 0x15a   :  { %v830_v19 = vadd.f32 %v914_v16, %v821_v17  ;;  %v831_v20 = vadd.f32 %v914_v16, %v822_v18 }
 0x15c   :  { %832 = vst [vmem:[%s1167_s4] sm:$0xff] %v830_v19  ;;  %833 = vst [vmem:[%s1167_s4 + $0x8] sm:$0xff] %v831_v20 }
 0x15d   :  { %838 = vsyncpa [#allocation3], 1 }

</bundles_post_ra>
